<compile_context>
chip_gen: v6e
topology: v6e:2x2x1
jax: 0.10.0
libtpu: 0.0.40
codegen_flags: <defaults>
</compile_context>

<pallas_src>
import jax
import jax.numpy as jnp
import numpy as np
from jax.experimental import pallas as pl
from jax.experimental.pallas import tpu as pltpu

EOS_WORD_VALUE = 3  # ids 0..3 are special tokens; real categories start at 4


def _round_up(x: int, m: int) -> int:
    return ((x + m - 1) // m) * m


# ----------------------------------------------------------------------------
# Kernel
# ----------------------------------------------------------------------------
def _make_label_kernel(tokens_ref, out_ref):
    """out[b, j] = 1 iff any tokens[b, s] equals category id 4 + j_global.

    Lane j of L-tile `pl.program_id(1)` carries category id
        4 + program_id(1) * TL + j
    Token ids 0..3 (PAD/SOS/EOS/UNK) can never match, so the original
    `i > EOS_WORD_VALUE` guard is implied and omitted.
    """
    TB, TL = out_ref.shape
    S = tokens_ref.shape[1]

    itemsize = np.dtype(out_ref.dtype).itemsize
    RG = max(8, 32 // itemsize)           # sublane row-group: 8 (f32), 16 (bf16)
    if TB % RG != 0:
        RG = 8
    n_rg = TB // RG

    # Lane chunk: 1-4 f32 vregs of accumulator; always divides TL (mult of 128).
    SC = 512 if TL % 512 == 0 else (256 if TL % 256 == 0 else 128)
    n_lc = TL // SC

    # (1, TL) lane-iota of category ids; broadcast against (RG, 1) token cols.
    base = pl.program_id(1) * TL + 4
    cat_ids = jax.lax.broadcasted_iota(jnp.int32, (1, TL), 1) + base

    def row_body(r):
        r0 = r * RG
        if not isinstance(r, int):
            r0 = pl.multiple_of(r0, RG)
        toks = tokens_ref[pl.ds(r0, RG), :]                   # (RG, S) int32
        if S <= 32:
            tok_cols = [toks[:, s:s + 1] for s in range(S)]   # (RG, 1) each
        for c in range(n_lc):
            cat = cat_ids[:, c * SC:(c + 1) * SC]             # (1, SC)
            acc = jnp.zeros((RG, SC), jnp.float32)            # register-resident
            if S <= 32:
                # Fully unrolled: one compare + select per token column, pure
                # VPU work on a 1-4 vreg accumulator.
                for s in range(S):
                    acc = jnp.where(tok_cols[s] == cat, 1.0, acc)
            else:
                # Large S: bounded code size, small unroll for LLO co-issue.
                def s_body(s, a):
                    tok = jax.lax.dynamic_slice(toks, (0, s), (RG, 1))
                    return jnp.where(tok == cat, 1.0, a)
                acc = jax.lax.fori_loop(0, S, s_body, acc, unroll=4)
            # Exactly one store per output element.
            out_ref[pl.ds(r0, RG), pl.ds(c * SC, SC)] = acc.astype(out_ref.dtype)

    if n_rg <= 8:
        for r in range(n_rg):             # full unroll: scheduler visibility
            row_body(r)
    else:
        def _body(r, carry):
            row_body(r)
            return carry
        jax.lax.fori_loop(0, n_rg, _body, 0)


# ----------------------------------------------------------------------------
# Wrapper
# ----------------------------------------------------------------------------
def pallas_make_label(tokens: jax.Array, num_category: int, *,
                      tb_max: int = 256, tl_max: int = 2048,
                      out_dtype=jnp.float32) -> jax.Array:
    """Batched BaseModel.make_label: (B, S) int tokens -> (B, L) multi-hot."""
    tokens = jnp.asarray(tokens, dtype=jnp.int32)
    B, S = tokens.shape
    L = int(num_category) - 4
    if L <= 0:
        raise ValueError("num_category must be > 4")

    itemsize = np.dtype(out_dtype).itemsize
    sub = max(8, 32 // itemsize)          # sublane granule for the out dtype

    tb_cap = max(sub, (tb_max // sub) * sub)
    tl_cap = max(128, (tl_max // 128) * 128)
    TB = min(_round_up(B, sub), tb_cap)
    TL = min(_round_up(L, 128), tl_cap)

    # v7x has 2 TensorCores: ensure >= 2 parallel grid steps when splittable.
    if pl.cdiv(B, TB) * pl.cdiv(L, TL) < 2:
        if L > 128 and TL >= 256:
            TL = _round_up(pl.cdiv(TL, 2), 128)
        elif B > sub and TB >= 2 * sub:
            TB = _round_up(pl.cdiv(TB, 2), sub)

    # L tiles innermost: the token block index is constant across j, so the
    # (TB, S) token tile is not re-DMA'd per L tile.
    grid = (pl.cdiv(B, TB), pl.cdiv(L, TL))

    return pl.pallas_call(
        _make_label_kernel,
        out_shape=jax.ShapeDtypeStruct((B, L), out_dtype),   # unpadded; Pallas
        grid=grid,                                           # masks edge tiles
        in_specs=[pl.BlockSpec((TB, S), lambda i, j: (i, 0))],
        out_specs=pl.BlockSpec((TB, TL), lambda i, j: (i, j)),
        compiler_params=pltpu.CompilerParams(
            dimension_semantics=("parallel", "parallel")),
        cost_estimate=pl.CostEstimate(
            flops=B * S * L,
            transcendentals=0,
            bytes_accessed=4 * B * S + itemsize * B * L),
    )(tokens)


class BaseModelPallas:
    """JAX/Pallas mirror of the PyTorch BaseModel interface."""

    def __init__(self, model_settings):
        self.model_settings = model_settings
        self.device = model_settings.get("device", "tpu")

    # forward/predict/compute_logit/compute_loss are `pass` (abstract) in the
    # PyTorch base class; nothing to implement here.
    def forward(self, input):
        return None

    def predict(self, input):
        return None

    def compute_logit(self, input):
        return None

    def compute_loss(self, x, y):
        return None

    def assemble_tensor(self, input):
        review, aspect_label, label = input
        # `.to(device)` is pure placement; JAX arrays are already on-device.
        return (jnp.asarray(review), jnp.asarray(aspect_label),
                jnp.asarray(label))

    def get_model_name(self):
        return "BaseModelPallas"

    def make_label(self, l):
        tokens = jnp.asarray(l, dtype=jnp.int32)
        squeeze = tokens.ndim == 1
        if squeeze:
            tokens = tokens[None, :]
        out = pallas_make_label(tokens, self.model_settings["num_category"])
        return out[0] if squeeze else out


# ----------------------------------------------------------------------------
# Demo / self-check
# ----------------------------------------------------------------------------
def _reference_make_label(tokens, num_category):
    """Pure-JAX reference of the PyTorch make_label loop, batched."""
    L = num_category - 4
    cat = jnp.arange(L)[None, None, :] + 4
    hit = (tokens[:, :, None] == cat) & (tokens[:, :, None] > EOS_WORD_VALUE)
    return jnp.any(hit, axis=1).astype(jnp.float32)


if __name__ == "__main__":
    key = jax.random.PRNGKey(0)
    k1, k2, k3, k4, k5 = jax.random.split(key, 5)

    # ---- Case 1: small, lane-exact shapes (B=2, S=8, L=128) ------------------
    B, S = 2, 8
    num_category = 132                      # -> L = 128
    L = num_category - 4

    review = jax.random.randint(k1, (B, S), 0, num_category, dtype=jnp.int32)
    aspect_label = jax.random.uniform(k2, (B, L), dtype=jnp.float32)
    label = jax.random.uniform(k3, (B, L), dtype=jnp.float32)

    model = BaseModelPallas({"device": "tpu", "num_category": num_category})

    r_out, a_out, l_out = model.assemble_tensor((review, aspect_label, label))
    mh = model.make_label(review)
    jax.block_until_ready((r_out, a_out, l_out, mh))

    assert jnp.array_equal(r_out, review)
    assert jnp.array_equal(a_out, aspect_label)
    assert jnp.array_equal(l_out, label)
    ref = _reference_make_label(review, num_category)
    assert mh.shape == (B, L) and jnp.array_equal(mh, ref)

    # 1-D input path (matches the original PyTorch single-sequence signature)
    mh1 = model.make_label(review[0])
    jax.block_until_ready(mh1)
    assert jnp.array_equal(mh1, ref[0])

    # ---- Case 2: ragged shapes -> 2x3 grid with masked edge tiles ------------
    B2, S2, num_category2 = 10, 16, 300     # L = 296
    review2 = jax.random.randint(k4, (B2, S2), 0, num_category2,
                                 dtype=jnp.int32)
    mh2 = pallas_make_label(review2, num_category2, tb_max=8, tl_max=128)
    jax.block_until_ready(mh2)
    ref2 = _reference_make_label(review2, num_category2)
    assert mh2.shape == ref2.shape and jnp.array_equal(mh2, ref2)

    # ---- Case 3: L=1024 -> megacore split to grid (1,2), register-chunked
    # inner loop; also the narrow-dtype (bf16) output path for v5e. -----------
    B3, S3, num_category3 = 16, 8, 1028     # L = 1024
    review3 = jax.random.randint(k5, (B3, S3), 0, num_category3,
                                 dtype=jnp.int32)
    ref3 = _reference_make_label(review3, num_category3)
    mh3 = pallas_make_label(review3, num_category3)
    mh3_bf16 = pallas_make_label(review3, num_category3,
                                 out_dtype=jnp.bfloat16)
    jax.block_until_ready((mh3, mh3_bf16))
    assert jnp.array_equal(mh3, ref3)
    assert mh3_bf16.dtype == jnp.bfloat16
    assert jnp.array_equal(mh3_bf16.astype(jnp.float32), ref3)

    print("KERNEL_OK")
</pallas_src>

<mosaic_0001>
module attributes {stable_mosaic.version = 11 : i64} {
  func.func @_make_label_kernel(%arg0: i32, %arg1: i32, %arg2: memref<8x8xi32, #tpu.memory_space<vmem>>, %arg3: memref<8x128xf32, #tpu.memory_space<vmem>>) attributes {dimension_semantics = [#tpu.dimension_semantics<parallel>, #tpu.dimension_semantics<parallel>], iteration_bounds = array<i64: 1, 1>, scalar_prefetch = 0 : i64, scratch_operands = 0 : i64, tpu.core_type = #tpu.core_type<tc>, window_params = [{transform_indices = @transform_0, window_bounds = array<i64: 8, 8>}, {transform_indices = @transform_1, window_bounds = array<i64: 8, 128>}]} {
    %c128_i32 = arith.constant 128 : i32
    %0 = arith.muli %arg1, %c128_i32 : i32
    %c4_i32 = arith.constant 4 : i32
    %1 = arith.addi %0, %c4_i32 : i32
    %2 = tpu.iota {dimensions = array<i32: 1>} : vector<1x128xi32>
    %3 = vector.broadcast %1 : i32 to vector<1x128xi32>
    %4 = arith.addi %2, %3 : vector<1x128xi32>
    %c0 = arith.constant 0 : index
    %c0_0 = arith.constant 0 : index
    %5 = vector.load %arg2[%c0, %c0_0] : memref<8x8xi32, #tpu.memory_space<vmem>>, vector<8x8xi32>
    %6 = vector.extract_strided_slice %5 {offsets = [0, 0], sizes = [8, 1], strides = [1, 1]} : vector<8x8xi32> to vector<8x1xi32>
    %7 = vector.extract_strided_slice %5 {offsets = [0, 1], sizes = [8, 1], strides = [1, 1]} : vector<8x8xi32> to vector<8x1xi32>
    %8 = vector.extract_strided_slice %5 {offsets = [0, 2], sizes = [8, 1], strides = [1, 1]} : vector<8x8xi32> to vector<8x1xi32>
    %9 = vector.extract_strided_slice %5 {offsets = [0, 3], sizes = [8, 1], strides = [1, 1]} : vector<8x8xi32> to vector<8x1xi32>
    %10 = vector.extract_strided_slice %5 {offsets = [0, 4], sizes = [8, 1], strides = [1, 1]} : vector<8x8xi32> to vector<8x1xi32>
    %11 = vector.extract_strided_slice %5 {offsets = [0, 5], sizes = [8, 1], strides = [1, 1]} : vector<8x8xi32> to vector<8x1xi32>
    %12 = vector.extract_strided_slice %5 {offsets = [0, 6], sizes = [8, 1], strides = [1, 1]} : vector<8x8xi32> to vector<8x1xi32>
    %13 = vector.extract_strided_slice %5 {offsets = [0, 7], sizes = [8, 1], strides = [1, 1]} : vector<8x8xi32> to vector<8x1xi32>
    %cst = arith.constant 0.000000e+00 : f32
    %14 = vector.broadcast %cst : f32 to vector<8x128xf32>
    %15 = vector.broadcast %6 : vector<8x1xi32> to vector<8x128xi32>
    %16 = vector.broadcast %4 : vector<1x128xi32> to vector<8x128xi32>
    %17 = arith.cmpi eq, %15, %16 : vector<8x128xi32>
    %cst_1 = arith.constant 1.000000e+00 : f32
    %18 = vector.broadcast %cst_1 : f32 to vector<8x128xf32>
    %19 = arith.select %17, %18, %14 : vector<8x128xi1>, vector<8x128xf32>
    %20 = vector.broadcast %7 : vector<8x1xi32> to vector<8x128xi32>
    %21 = vector.broadcast %4 : vector<1x128xi32> to vector<8x128xi32>
    %22 = arith.cmpi eq, %20, %21 : vector<8x128xi32>
    %cst_2 = arith.constant 1.000000e+00 : f32
    %23 = vector.broadcast %cst_2 : f32 to vector<8x128xf32>
    %24 = arith.select %22, %23, %19 : vector<8x128xi1>, vector<8x128xf32>
    %25 = vector.broadcast %8 : vector<8x1xi32> to vector<8x128xi32>
    %26 = vector.broadcast %4 : vector<1x128xi32> to vector<8x128xi32>
    %27 = arith.cmpi eq, %25, %26 : vector<8x128xi32>
    %cst_3 = arith.constant 1.000000e+00 : f32
    %28 = vector.broadcast %cst_3 : f32 to vector<8x128xf32>
    %29 = arith.select %27, %28, %24 : vector<8x128xi1>, vector<8x128xf32>
    %30 = vector.broadcast %9 : vector<8x1xi32> to vector<8x128xi32>
    %31 = vector.broadcast %4 : vector<1x128xi32> to vector<8x128xi32>
    %32 = arith.cmpi eq, %30, %31 : vector<8x128xi32>
    %cst_4 = arith.constant 1.000000e+00 : f32
    %33 = vector.broadcast %cst_4 : f32 to vector<8x128xf32>
    %34 = arith.select %32, %33, %29 : vector<8x128xi1>, vector<8x128xf32>
    %35 = vector.broadcast %10 : vector<8x1xi32> to vector<8x128xi32>
    %36 = vector.broadcast %4 : vector<1x128xi32> to vector<8x128xi32>
    %37 = arith.cmpi eq, %35, %36 : vector<8x128xi32>
    %cst_5 = arith.constant 1.000000e+00 : f32
    %38 = vector.broadcast %cst_5 : f32 to vector<8x128xf32>
    %39 = arith.select %37, %38, %34 : vector<8x128xi1>, vector<8x128xf32>
    %40 = vector.broadcast %11 : vector<8x1xi32> to vector<8x128xi32>
    %41 = vector.broadcast %4 : vector<1x128xi32> to vector<8x128xi32>
    %42 = arith.cmpi eq, %40, %41 : vector<8x128xi32>
    %cst_6 = arith.constant 1.000000e+00 : f32
    %43 = vector.broadcast %cst_6 : f32 to vector<8x128xf32>
    %44 = arith.select %42, %43, %39 : vector<8x128xi1>, vector<8x128xf32>
    %45 = vector.broadcast %12 : vector<8x1xi32> to vector<8x128xi32>
    %46 = vector.broadcast %4 : vector<1x128xi32> to vector<8x128xi32>
    %47 = arith.cmpi eq, %45, %46 : vector<8x128xi32>
    %cst_7 = arith.constant 1.000000e+00 : f32
    %48 = vector.broadcast %cst_7 : f32 to vector<8x128xf32>
    %49 = arith.select %47, %48, %44 : vector<8x128xi1>, vector<8x128xf32>
    %50 = vector.broadcast %13 : vector<8x1xi32> to vector<8x128xi32>
    %51 = vector.broadcast %4 : vector<1x128xi32> to vector<8x128xi32>
    %52 = arith.cmpi eq, %50, %51 : vector<8x128xi32>
    %cst_8 = arith.constant 1.000000e+00 : f32
    %53 = vector.broadcast %cst_8 : f32 to vector<8x128xf32>
    %54 = arith.select %52, %53, %49 : vector<8x128xi1>, vector<8x128xf32>
    %c0_9 = arith.constant 0 : index
    %c0_10 = arith.constant 0 : index
    %55 = vector.load %arg3[%c0_9, %c0_10] : memref<8x128xf32, #tpu.memory_space<vmem>>, vector<8x128xf32>
    tpu.vector_store %arg3[%c0_9, %c0_10], %54 {strides = array<i32>} : memref<8x128xf32, #tpu.memory_space<vmem>>, vector<8x128xf32>,
    return
  }
  func.func @transform_0(%arg0: i32, %arg1: i32) -> (i32, i32) {
    %c0_i32 = arith.constant 0 : i32
    %c0_i32_0 = arith.constant 0 : i32
    return %arg0, %c0_i32 : i32, i32
  }
  func.func @transform_1(%arg0: i32, %arg1: i32) -> (i32, i32) {
    %c0_i32 = arith.constant 0 : i32
    return %arg0, %arg1 : i32, i32
  }
}

</mosaic_0001>

<bundles_post_ra>
// kernel: tpu_custom_call.1
= control target key start
LH: loop header
LB: loop body
LE: loop exit
PB: predicated region body
PF: predicated region fallthrough
CT: control target
= control target key end

     0   :  { %6 = vsyncpa [#allocation3], 0  ;;  %s189_s0 = inlined_call_operand.hbm [shape: s32[2,8], index: 0, kind: input, shape index: {}]   ;;  %s190_s1 = inlined_call_operand.hbm [shape: f32[2,128], index: 1, kind: output, shape index: {}]  }
   0x1   :  { %7 = vsyncpa [#allocation4], 0 }
   0x2   :  { %12 = vsyncadd [#allocation3], 96  ;;  %s154_s6 = smov [#allocation2]  }
   0x3   :  { %s13_s7 = sshll.u32 %s154_s6, 4  ;;  %s14_s7 = int_to_ptr.vmem [resolvable:$true] %s13_s7 }
   0x4   :  { %s118_s8 = scalar_lea.vmem %s14_s7, 32  ;;  %s122_s9 = scalar_lea.vmem %s14_s7, 128 }
   0x5   :  { %p119_p0 = scmp.ne.s32.totalorder %s14_s7, %s118_s8  ;;  %p123_p1 = scmp.lt.s32.totalorder %s14_s7, %s14_s7 }
   0x6   :  { %p124_p2 = scmp.lt.s32.totalorder %s122_s9, %s118_s8 }
   0x8   :  { %p125_p3 = por %p124_p2, %p123_p1 }
   0xa   :  { %p126_p4 = pnand %p125_p3, %p119_p0 }
   0xc   :  { %129 = shalt.err (!%p126_p4)
}
   0xd   :  { %s155_s10 = smov 32   ;;  %s156_s11 = smov 2  }
   0xe   :  { %19 = dma.hbm_to_vmem [thread:$0]  %s189_s0, 32, %s14_s7, [#allocation3], %s155_s10, %s155_s10, %s156_s11  }
   0xf   :  { %150 = dma.done.wait [#allocation3], 128  }
  0x10   :  { %151 = vsyncadd [#allocation3], 4294967168  ;;  %v157_v0 = vmov 2   ;;  %v158_v1 = vmov 0   ;;  %v29_v2 = vld [vmem:[#allocation2] sm:$0xff]  ;;  %v159_v3 = vmov 3   ;;  %v25_v9 = vlaneseq }
  0x11   :  { %103 = vset.pattern.permute.xlu1 %v157_v0  ;;  %101 = vset.pattern.permute.xlu0 %v158_v1  ;;  %v160_v4 = vmov 1   ;;  %v161_v5 = vmov 4   ;;  %v162_v6 = vmov 5   ;;  %v163_v7 = vmov 6  }
  0x12   :  { %41 = vperm.xlu1 %103, %v29_v2   ;;  %31 = vperm.xlu0 %101, %v29_v2   ;;  %v164_v8 = vmov 7   ;;  %v26_v10 = vand.u32 127, %v25_v9  ;;  %v165_v16 = vmov 0.0  }
  0x14   :  { %v28_v13 = vadd.s32 4, %v26_v10 }
  0x16   :  { %104 = vset.pattern.permute.xlu1 %v159_v3  ;;  %102 = vset.pattern.permute.xlu0 %v160_v4 }
  0x17   :  { %46 = vperm.xlu1 %104, %v29_v2   ;;  %36 = vperm.xlu0 %102, %v29_v2  }
  0x1b   :  { %105 = vset.pattern.permute.xlu1 %v161_v5  ;;  %106 = vset.pattern.permute.xlu0 %v162_v6 }
  0x1c   :  { %51 = vperm.xlu1 %105, %v29_v2   ;;  %56 = vperm.xlu0 %106, %v29_v2  }
  0x20   :  { %107 = vset.pattern.permute.xlu1 %v163_v7  ;;  %109 = vset.pattern.permute.xlu0 %v164_v8 }
  0x21   :  { %61 = vperm.xlu1 %107, %v29_v2  }
  0x25   :  { %108 = vset.pattern.permute.xlu1 %v164_v8 }
  0x26   :  { %66 = vperm.xlu1 %108, %v29_v2  }
  0x8d   :  { %v42_v11 = vpop.permute.xlu1 %41  ;;  %v32_v12 = vpop.permute.xlu0 %31 }
  0x8e   :  { %vm33_vm0 = vcmp.eq.s32.totalorder %v32_v12, %v28_v13  ;;  %vm43_vm2 = vcmp.eq.s32.totalorder %v42_v11, %v28_v13 }
  0x8f   :  { %v34_v17 = vsel %vm33_vm0, 1.0, %v165_v16 }
  0x92   :  { %v47_v14 = vpop.permute.xlu1 %46  ;;  %v37_v15 = vpop.permute.xlu0 %36 }
  0x93   :  { %vm38_vm1 = vcmp.eq.s32.totalorder %v37_v15, %v28_v13  ;;  %vm48_vm4 = vcmp.eq.s32.totalorder %v47_v14, %v28_v13 }
  0x94   :  { %v39_v18 = vsel %vm38_vm1, 1.0, %v34_v17 }
  0x95   :  { %v44_v20 = vsel %vm43_vm2, 1.0, %v39_v18 }
  0x96   :  { %v49_v23 = vsel %vm48_vm4, 1.0, %v44_v20 }
  0x97   :  { %v52_v19 = vpop.permute.xlu1 %51  ;;  %v57_v21 = vpop.permute.xlu0 %56 }
  0x98   :  { %vm53_vm3 = vcmp.eq.s32.totalorder %v52_v19, %v28_v13  ;;  %vm58_vm5 = vcmp.eq.s32.totalorder %v57_v21, %v28_v13 }
  0x99   :  { %v54_v24 = vsel %vm53_vm3, 1.0, %v49_v23 }
  0x9a   :  { %v59_v25 = vsel %vm58_vm5, 1.0, %v54_v24 }
  0x9c   :  { %v62_v22 = vpop.permute.xlu1 %61 }
  0x9d   :  { %vm63_vm6 = vcmp.eq.s32.totalorder %v62_v22, %v28_v13 }
  0x9e   :  { %v64_v27 = vsel %vm63_vm6, 1.0, %v59_v25 }
  0xa1   :  { %v67_v26 = vpop.permute.xlu1 %66 }
  0xa2   :  { %vm68_vm7 = vcmp.eq.s32.totalorder %v67_v26, %v28_v13 }
  0xa3   :  { %v69_v28 = vsel %vm68_vm7, 1.0, %v64_v27 }
  0xa4   :  { %70 = vst [vmem:[#allocation5] sm:$0xff] %v69_v28 }
  0xa5   :  { %75 = vsyncadd [#allocation4], 96  ;;  %s166_s0 = smov [#allocation5]  }
  0xa6   :  { %s76_s14 = sshll.u32 %s166_s0, 4  ;;  %s77_s14 = int_to_ptr.vmem [resolvable:$true] %s76_s14 }
  0xa7   :  { %s130_s15 = scalar_lea.vmem %s77_s14, 32  ;;  %s134_s16 = scalar_lea.vmem %s77_s14, 128 }
  0xa8   :  { %p131_p5 = scmp.ne.s32.totalorder %s77_s14, %s130_s15  ;;  %p135_p6 = scmp.lt.s32.totalorder %s77_s14, %s77_s14 }
  0xa9   :  { %p136_p7 = scmp.lt.s32.totalorder %s134_s16, %s130_s15 }
  0xab   :  { %p137_p8 = por %p136_p7, %p135_p6 }
  0xad   :  { %p138_p9 = pnand %p137_p8, %p131_p5 }
  0xaf   :  { %141 = shalt.err (!%p138_p9)
}
  0xb0   :  { %82 = dma.vmem_to_hbm [thread:$0]  %s77_s14, 32, %s190_s1, [#allocation4], %s155_s10, %s155_s10, %s156_s11  }
  0xb1   :  { %152 = dma.done.wait [#allocation4], 128  }
  0xb2   :  { %153 = vsyncadd [#allocation4], 4294967168 }
  0xb3   :  { %86 = vsyncpa [#allocation3], 1 }
  0xb4   :  { %87 = vsyncpa [#allocation4], 1 }

</bundles_post_ra>
